<compile_context>
chip_gen: v7x
topology: tpu7x:2x2x1
jax: 0.10.0
libtpu: 0.0.40
codegen_flags: <defaults>
</compile_context>

<pallas_src>
import functools
import math

import jax
import jax.numpy as jnp
from jax import lax
from jax.experimental import pallas as pl
from jax.experimental.pallas import tpu as pltpu


def _round_up(x, m):
    return (x + m - 1) // m * m


def _pick_tile(dim, cap=512):
    """min(cap, 128-rounded dim); the dim is padded up to a tile multiple."""
    return min(cap, _round_up(dim, 128))


# ----------------------------- Pallas kernels ------------------------------

def _mm_kernel(a_ref, w_ref, b_ref, o_ref, acc_ref, *, lrelu):
    @pl.when(pl.program_id(2) == 0)
    def _():
        acc_ref[...] = jnp.zeros_like(acc_ref)

    acc_ref[...] += jnp.dot(a_ref[...], w_ref[...],
                            preferred_element_type=jnp.float32)

    @pl.when(pl.program_id(2) == pl.num_programs(2) - 1)
    def _():
        y = acc_ref[...] + b_ref[...]
        if lrelu:
            y = jnp.where(y >= 0, y, 0.1 * y)
        o_ref[...] = y.astype(o_ref.dtype)


def _matmul_pallas(a, w, b, lrelu, out_dtype, tm, tn, tk):
    Mp, Kp = a.shape
    _, Np = w.shape
    grid = (Mp // tm, Np // tn, Kp // tk)
    out_bytes = jnp.dtype(out_dtype).itemsize
    vmem = (2 * 2 * (tm * tk + tk * tn)          # double-buffered bf16 inputs
            + 2 * tm * tn * out_bytes            # double-buffered output
            + tm * tn * 4                        # f32 accumulator scratch
            + 2 * tn * 4)                        # bias
    vmem = int(min(max(vmem + (4 << 20), 8 << 20), 32 << 20))
    return pl.pallas_call(
        functools.partial(_mm_kernel, lrelu=lrelu),
        out_shape=jax.ShapeDtypeStruct((Mp, Np), out_dtype),
        grid_spec=pltpu.PrefetchScalarGridSpec(
            num_scalar_prefetch=0,
            grid=grid,
            in_specs=[
                pl.BlockSpec((tm, tk), lambda i, j, k: (i, k)),
                pl.BlockSpec((tk, tn), lambda i, j, k: (k, j)),
                pl.BlockSpec((1, tn), lambda i, j, k: (0, j)),
            ],
            out_specs=pl.BlockSpec((tm, tn), lambda i, j, k: (i, j)),
            scratch_shapes=[pltpu.VMEM((tm, tn), jnp.float32)],
        ),
        compiler_params=pltpu.CompilerParams(
            dimension_semantics=("parallel", "parallel", "arbitrary"),
            vmem_limit_bytes=vmem),
    )(a, w, b)


def matmul_bias_act(a, w, bias, lrelu, out_dtype=jnp.float32):
    """a:(M,K) bf16, w:(K,N) bf16, bias:(N,) -> (M,N) = act(a @ w + bias)."""
    M, K = a.shape
    _, N = w.shape
    bias = bias.astype(jnp.float32)
    if M < 128 or N < 16 or K < 16:
        # Tiny problem: 128-padding + launch overhead dominate -- plain XLA dot.
        y = jnp.dot(a, w, preferred_element_type=jnp.float32) + bias[None, :]
        if lrelu:
            y = jnp.where(y >= 0, y, 0.1 * y)
        return y.astype(out_dtype)
    tm, tk, tn = _pick_tile(M), _pick_tile(K), _pick_tile(N)
    Mp, Kp, Np = _round_up(M, tm), _round_up(K, tk), _round_up(N, tn)
    if Mp // tm == 1 and Np // tn == 1 and Mp >= 256:
        # Give v7x's second TensorCore something to do (>=2 parallel blocks).
        tm = 128
        Mp = _round_up(M, tm)
    ap = jnp.pad(a, ((0, Mp - M), (0, Kp - K)))
    wp = jnp.pad(w, ((0, Kp - K), (0, Np - N)))
    bp = jnp.pad(bias.reshape(1, -1), ((0, 0), (0, Np - N)))
    out = _matmul_pallas(ap, wp, bp, lrelu, out_dtype, tm, tn, tk)
    return out[:M, :N]


def _corr_kernel(f1_ref, f2p_ref, o_ref, *, side, inv_c):
    dy = pl.program_id(0)
    B, H, W, C = f1_ref.shape
    f1 = f1_ref[...]                                       # (B,H,W,C) bf16
    for dx in range(side):                                 # static unroll
        win = f2p_ref[:, pl.ds(dy, H), dx:dx + W, :]       # (B,H,W,C) bf16
        s = jnp.sum((f1 * win).astype(jnp.float32), axis=-1) * inv_c
        o_ref[dx] = jnp.where(s >= 0, s, 0.1 * s)          # fused LeakyReLU


@functools.partial(jax.jit, static_argnames=("md",))
def correlation_lrelu(f1, f2, md=4):
    """Correlation(pad=md, k=1, max_disp=md, stride=1) + LeakyReLU(0.1).

    f1, f2: NHWC (B, H, W, C).  Returns (B, H, W, (2*md+1)^2); displacement
    channels in row-major (dy, dx) order; normalized by 1/C."""
    B, H, W, C = f1.shape
    side = 2 * md + 1
    nd = side * side
    Hp, Wp = H + 2 * md, W + 2 * md
    f1b = f1.astype(jnp.bfloat16)
    f2p = jnp.pad(f2.astype(jnp.bfloat16),
                  ((0, 0), (md, md), (md, md), (0, 0)))
    vmem = (2 * 2 * B * C * (H * W + Hp * Wp)     # bf16 inputs, double-buffered
            + 2 * 4 * side * B * H * W)           # f32 output block
    vmem = int(min(max(vmem + (4 << 20), 8 << 20), 32 << 20))
    out = pl.pallas_call(
        functools.partial(_corr_kernel, side=side, inv_c=1.0 / C),
        out_shape=jax.ShapeDtypeStruct((nd, B, H, W), jnp.float32),
        grid_spec=pltpu.PrefetchScalarGridSpec(
            num_scalar_prefetch=0,
            grid=(side,),                                  # dy only: 9 steps
            in_specs=[
                pl.BlockSpec((B, H, W, C), lambda d: (0, 0, 0, 0)),
                pl.BlockSpec((B, Hp, Wp, C), lambda d: (0, 0, 0, 0)),
            ],
            out_specs=pl.BlockSpec((side, B, H, W), lambda d: (d, 0, 0, 0)),
        ),
        compiler_params=pltpu.CompilerParams(
            dimension_semantics=("parallel",),
            vmem_limit_bytes=vmem),
    )(f1b, f2p)
    return out.transpose(1, 2, 3, 0)              # (B, H, W, nd) -- tiny copy


# ------------------------------ conv wrappers -------------------------------

@functools.partial(jax.jit, static_argnames=("stride", "padding", "dilation",
                                             "lrelu", "out_dtype"))
def conv2d(x, w, b, *, stride=1, padding=0, dilation=1, lrelu=False,
           out_dtype=jnp.float32):
    """NHWC Conv2d (PyTorch weight layout (Cout,Cin,KH,KW)) via bf16 im2col +
    Pallas MXU matmul with fused bias + optional LeakyReLU(0.1)."""
    N, H, W, Cin = x.shape
    Cout, _, KH, KW = w.shape
    OH = (H + 2 * padding - dilation * (KH - 1) - 1) // stride + 1
    OW = (W + 2 * padding - dilation * (KW - 1) - 1) // stride + 1
    xp = jnp.pad(x.astype(jnp.bfloat16),
                 ((0, 0), (padding, padding), (padding, padding), (0, 0)))
    patches = []
    for kh in range(KH):
        for kw in range(KW):
            h0, w0 = kh * dilation, kw * dilation
            patches.append(xp[:, h0:h0 + (OH - 1) * stride + 1:stride,
                              w0:w0 + (OW - 1) * stride + 1:stride, :])
    pk = patches[0] if len(patches) == 1 else jnp.concatenate(patches, axis=-1)
    A = pk.reshape(N * OH * OW, KH * KW * Cin)
    Wm = w.astype(jnp.bfloat16).transpose(2, 3, 1, 0).reshape(KH * KW * Cin,
                                                              Cout)
    y = matmul_bias_act(A, Wm, b, lrelu, out_dtype)
    return y.reshape(N, OH, OW, Cout)


@jax.jit
def conv_transpose2d(x, w, b):
    """PyTorch ConvTranspose2d(kernel=4, stride=2, padding=1); NHWC input,
    weight layout (Cin, Cout, 4, 4).  Lowered to a single 3x3 conv over the
    once-padded input producing 4*Cout parity channels + depth-to-space."""
    N, H, W, Cin = x.shape
    _, Cout, _, _ = w.shape
    wt = jnp.transpose(w, (1, 0, 2, 3))                   # (Cout, Cin, 4, 4)
    zr = jnp.zeros_like(wt[..., :1, :])                   # (Cout, Cin, 1, 4)
    rows = [jnp.concatenate([wt[..., 3:4, :], wt[..., 1:2, :], zr], axis=2),
            jnp.concatenate([zr, wt[..., 2:3, :], wt[..., 0:1, :]], axis=2)]
    ks = []
    for py in range(2):
        r = rows[py]                                      # (Cout, Cin, 3, 4)
        zc = jnp.zeros_like(r[..., :1])                   # (Cout, Cin, 3, 1)
        ks.append(jnp.concatenate([r[..., 3:4], r[..., 1:2], zc], axis=3))
        ks.append(jnp.concatenate([zc, r[..., 2:3], r[..., 0:1]], axis=3))
    wk = jnp.concatenate(ks, axis=0)                      # (4*Cout, Cin, 3, 3)
    bk = jnp.tile(b, 4)
    xp = jnp.pad(x, ((0, 0), (1, 1), (1, 1), (0, 0)))
    y = conv2d(xp, wk, bk, stride=1, padding=0)           # (N, H, W, 4*Cout)
    y = y.reshape(N, H, W, 2, 2, Cout).transpose(0, 1, 3, 2, 4, 5)
    return y.reshape(N, 2 * H, 2 * W, Cout)


# ------------------------------ JAX glue ops --------------------------------

@functools.partial(jax.jit, static_argnames=("lrelu",))
def batchnorm(x, gamma, beta, *, lrelu=False):
    # PyTorch training-mode forward: biased batch statistics, eps=1e-3. NHWC.
    # Single-pass stats (E[x], E[x^2]) + one fused normalize/affine/(LeakyReLU).
    x = x.astype(jnp.float32)
    mean = x.mean(axis=(0, 1, 2))
    var = jnp.maximum((x * x).mean(axis=(0, 1, 2)) - mean * mean, 0.0)
    scale = gamma * lax.rsqrt(var + 1e-3)
    shift = beta - mean * scale
    y = x * scale.reshape(1, 1, 1, -1) + shift.reshape(1, 1, 1, -1)
    if lrelu:
        y = jnp.where(y >= 0, y, 0.1 * y)
    return y


@jax.jit
def leaky_relu(x):
    return jnp.where(x >= 0, x, 0.1 * x)


@functools.partial(jax.jit, static_argnames=("scale",))
def upsample_bilinear(x, *, scale):
    # F.upsample(mode='bilinear'), align_corners=False, integer scale.
    # Constant-weight parity stencils: slicing + weighted adds (no gather).
    def up_axis(v, axis):
        n = v.shape[axis]
        lo = lax.slice_in_dim(v, 0, 1, axis=axis)
        hi = lax.slice_in_dim(v, n - 1, n, axis=axis)
        vm1 = jnp.concatenate(
            [lo, lax.slice_in_dim(v, 0, n - 1, axis=axis)], axis=axis)
        vp1 = jnp.concatenate(
            [lax.slice_in_dim(v, 1, n, axis=axis), hi], axis=axis)
        parts = []
        for p in range(scale):
            d = (p + 0.5) / scale - 0.5
            if d < 0:
                parts.append((-d) * vm1 + (1.0 + d) * v)
            else:
                parts.append((1.0 - d) * v + d * vp1)
        y = jnp.stack(parts, axis=axis + 1)
        shp = list(v.shape)
        shp[axis] = n * scale
        return y.reshape(shp)

    x = up_axis(x.astype(jnp.float32), 1)    # H
    x = up_axis(x, 2)                        # W
    return x


@jax.jit
def grid_sample_bilinear(x, grid):
    # TODO(synk): gather-heavy warp sampling stays in XLA (tiny at these sizes).
    # mode='bilinear', padding_mode='zeros', align_corners=False.  NHWC.
    B, H, W, C = x.shape
    gx, gy = grid[..., 0], grid[..., 1]
    ix = ((gx + 1.0) * W - 1.0) / 2.0
    iy = ((gy + 1.0) * H - 1.0) / 2.0
    x0f, y0f = jnp.floor(ix), jnp.floor(iy)
    wx1, wy1 = ix - x0f, iy - y0f
    wx0, wy0 = 1.0 - wx1, 1.0 - wy1
    bidx = jnp.arange(B).reshape(B, 1, 1)

    def tap(yc, xc, wgt):
        valid = ((xc >= 0) & (xc <= W - 1)
                 & (yc >= 0) & (yc <= H - 1)).astype(x.dtype)
        xi = jnp.clip(xc, 0, W - 1).astype(jnp.int32)
        yi = jnp.clip(yc, 0, H - 1).astype(jnp.int32)
        v = x[bidx, yi, xi]                               # (B, Hg, Wg, C)
        return v * (valid * wgt)[..., None]

    out = (tap(y0f, x0f, wy0 * wx0) + tap(y0f, x0f + 1, wy0 * wx1)
           + tap(y0f + 1, x0f, wy1 * wx0) + tap(y0f + 1, x0f + 1, wy1 * wx1))
    return out


@jax.jit
def warp(x, flow):
    # x: (B,H,W,C), flow: (B,H,W,2) with channel 0 = dx, 1 = dy.
    B, H, W, C = x.shape
    xx = jnp.arange(W, dtype=jnp.float32)[None, :]        # (1, W)
    yy = jnp.arange(H, dtype=jnp.float32)[:, None]        # (H, 1)
    vgx = 2.0 * (xx + flow[..., 0]) / max(W - 1, 1) - 1.0
    vgy = 2.0 * (yy + flow[..., 1]) / max(H - 1, 1) - 1.0
    vg = jnp.stack([vgx, vgy], axis=-1)                   # (B, H, W, 2)
    out = grid_sample_bilinear(x, vg)
    mask = grid_sample_bilinear(jnp.ones_like(x), vg)
    mask = jnp.where(mask < 0.9999, 0.0, 1.0)
    return out * mask


# ------------------------- deterministic parameters -------------------------

class ParamGen:
    def __init__(self, key):
        self._key = key

    def _next(self):
        self._key, k = jax.random.split(self._key)
        return k

    def normal(self, shape, scale=1.0):
        return scale * jax.random.normal(self._next(), shape, dtype=jnp.float32)


def init_conv_p(pg, cin, cout, k):
    fan = cin * k * k
    return {"w": pg.normal((cout, cin, k, k), 1.0 / math.sqrt(fan)),
            "b": pg.normal((cout,), 0.01)}


def init_convT_p(pg, cin, cout, k):
    fan = cin * k * k
    return {"w": pg.normal((cin, cout, k, k), 1.0 / math.sqrt(fan)),
            "b": pg.normal((cout,), 0.01)}


def init_bn_p(c):
    return {"gamma": jnp.ones((c,), jnp.float32),
            "beta": jnp.zeros((c,), jnp.float32)}


def init_bottleneck(pg, inplanes, planes, stride, with_downsample):
    p = {"stride": stride,
         "conv1": init_conv_p(pg, inplanes, planes, 1), "bn1": init_bn_p(planes),
         "conv2": init_conv_p(pg, planes, planes, 3), "bn2": init_bn_p(planes),
         "conv3": init_conv_p(pg, planes, planes * 4, 1),
         "bn3": init_bn_p(planes * 4)}
    if with_downsample:
        p["downsample"] = {"conv": init_conv_p(pg, inplanes, planes * 4, 1),
                           "bn": init_bn_p(planes * 4)}
    return p


def init_fpn(pg, out_channels=224):
    p = {"C1_1": {"conv": init_conv_p(pg, 3, 32, 3), "bn": init_bn_p(32)},
         "C1_2": {"conv": init_conv_p(pg, 32, 32, 3), "bn": init_bn_p(32)},
         "AOD": {"conv": init_conv_p(pg, 64, 32, 3), "bn": init_bn_p(32)}}
    inplanes = 32
    for name, planes in [("C2", 32), ("C3", 64), ("C4", 96),
                         ("C5", 128), ("C6", 160), ("C7", 192)]:
        blocks = [init_bottleneck(pg, inplanes, planes, 2, True)]
        inplanes = planes * 4
        for _ in range(2):
            blocks.append(init_bottleneck(pg, inplanes, planes, 1, False))
        p[name] = blocks
    for lvl, cin in [("P7", 768), ("P6", 640), ("P5", 512),
                     ("P4", 384), ("P3", 256), ("P2", 128)]:
        p[lvl + "_conv1"] = init_conv_p(pg, cin, out_channels, 1)
        p[lvl + "_conv2"] = init_conv_p(pg, out_channels, out_channels, 3)
    return p


_ND = 81
_DD = [128, 256, 352, 416, 448]   # np.cumsum([128,128,96,64,32])


def init_flow_level(pg, od, with_upfeat=True):
    ins = [od, od + _DD[0], od + _DD[1], od + _DD[2], od + _DD[3]]
    outs = [128, 128, 96, 64, 32]
    lp = {f"conv_{i}": init_conv_p(pg, ins[i], outs[i], 3) for i in range(5)}
    lp["predict"] = init_conv_p(pg, od + _DD[4], 2, 3)
    lp["deconv"] = init_convT_p(pg, 2, 2, 4)
    if with_upfeat:
        lp["upfeat"] = init_convT_p(pg, od + _DD[4], 2, 4)
    return lp


def init_flownet(pg):
    od = _ND + 224 + 4
    return {"l6": init_flow_level(pg, _ND),
            "l5": init_flow_level(pg, od), "l4": init_flow_level(pg, od),
            "l3": init_flow_level(pg, od),
            "l2": init_flow_level(pg, od, with_upfeat=False),
            "dc1": init_conv_p(pg, od + _DD[4], 128, 3),
            "dc2": init_conv_p(pg, 128, 128, 3), "dc3": init_conv_p(pg, 128, 128, 3),
            "dc4": init_conv_p(pg, 128, 96, 3), "dc5": init_conv_p(pg, 96, 64, 3),
            "dc6": init_conv_p(pg, 64, 32, 3), "dc7": init_conv_p(pg, 32, 2, 3)}


# ------------------------------ FPN forward ---------------------------------

def _cbr(pp, x):
    y = conv2d(x, pp["conv"]["w"], pp["conv"]["b"], stride=1, padding=1)
    return batchnorm(y, pp["bn"]["gamma"], pp["bn"]["beta"], lrelu=True)


def bottleneck_fwd(bp, x):
    res = x
    out = conv2d(x, bp["conv1"]["w"], bp["conv1"]["b"],
                 stride=bp["stride"], padding=0)
    out = batchnorm(out, bp["bn1"]["gamma"], bp["bn1"]["beta"], lrelu=True)
    # SamePad2d(3,1) + 3x3 conv == padding 1
    out = conv2d(out, bp["conv2"]["w"], bp["conv2"]["b"], stride=1, padding=1)
    out = batchnorm(out, bp["bn2"]["gamma"], bp["bn2"]["beta"], lrelu=True)
    out = conv2d(out, bp["conv3"]["w"], bp["conv3"]["b"], stride=1, padding=0)
    out = batchnorm(out, bp["bn3"]["gamma"], bp["bn3"]["beta"])
    if "downsample" in bp:
        ds = bp["downsample"]
        res = batchnorm(conv2d(x, ds["conv"]["w"], ds["conv"]["b"],
                               stride=bp["stride"], padding=0),
                        ds["bn"]["gamma"], ds["bn"]["beta"])
    return leaky_relu(out + res)


def fpn_forward(p, x):
    x = _cbr(p["C1_1"], x)
    trans = jnp.concatenate([_cbr(p["C1_2"], x), x], axis=-1)
    trans = _cbr(p["AOD"], trans)
    x = x * trans
    couts = []
    for name in ["C2", "C3", "C4", "C5", "C6", "C7"]:
        for blk in p[name]:
            x = bottleneck_fwd(blk, x)
        couts.append(x)
    c2, c3, c4, c5, c6, c7 = couts

    def pconv1(lvl, feat):
        q = p[lvl + "_conv1"]
        return conv2d(feat, q["w"], q["b"], stride=1, padding=0)

    p7 = pconv1("P7", c7)
    p6 = pconv1("P6", c6) + upsample_bilinear(p7, scale=2)
    p5 = pconv1("P5", c5) + upsample_bilinear(p6, scale=2)
    p4 = pconv1("P4", c4) + upsample_bilinear(p5, scale=2)
    p3 = pconv1("P3", c3) + upsample_bilinear(p4, scale=2)
    p2 = pconv1("P2", c2) + upsample_bilinear(p3, scale=2)

    def pconv2(lvl, feat):
        q = p[lvl + "_conv2"]
        return conv2d(feat, q["w"], q["b"], stride=1, padding=1)

    return [pconv2("P2", p2), pconv2("P3", p3), pconv2("P4", p4),
            pconv2("P5", p5), pconv2("P6", p6), pconv2("P7", p7)]


# ---------------------------- FlowNet forward --------------------------------

def _conv_lrelu(cp, x, padding=1, dilation=1):
    # Consumer is always another bf16 conv -> emit bf16 (halves writeback).
    return conv2d(x, cp["w"], cp["b"], stride=1, padding=padding,
                  dilation=dilation, lrelu=True, out_dtype=jnp.bfloat16)


def _dense_block(lp, x):
    x = x.astype(jnp.bfloat16)
    for i in range(5):
        x = jnp.concatenate([_conv_lrelu(lp[f"conv_{i}"], x), x], axis=-1)
    flow = conv2d(x, lp["predict"]["w"], lp["predict"]["b"], stride=1, padding=1)
    return x, flow


def _deconv(dp, x):
    return conv_transpose2d(x, dp["w"], dp["b"])


def flownet_forward(p, feats1, feats2):
    c11, c12, c13, c14, c15, c16 = feats1
    c21, c22, c23, c24, c25, c26 = feats2

    corr6 = correlation_lrelu(c16, c26, md=4)
    x, flow6 = _dense_block(p["l6"], corr6)
    up_flow = _deconv(p["l6"]["deconv"], flow6)
    up_feat = _deconv(p["l6"]["upfeat"], x)

    flows = []
    for lname, c1f, c2f, scale in [("l5", c15, c25, 0.625),
                                   ("l4", c14, c24, 1.25),
                                   ("l3", c13, c23, 2.5)]:
        warped = warp(c2f, up_flow * scale)
        corr = correlation_lrelu(c1f, warped, md=4)
        x = jnp.concatenate([corr, c1f, up_flow, up_feat], axis=-1)
        x, flow = _dense_block(p[lname], x)
        flows.append(flow)
        up_flow = _deconv(p[lname]["deconv"], flow)
        up_feat = _deconv(p[lname]["upfeat"], x)
    flow5, flow4, flow3 = flows

    warped = warp(c22, up_flow * 5.0)
    corr2 = correlation_lrelu(c12, warped, md=4)
    x = jnp.concatenate([corr2, c12, up_flow, up_feat], axis=-1)
    x, flow2 = _dense_block(p["l2"], x)

    xd = _conv_lrelu(p["dc1"], x, padding=1, dilation=1)
    xd = _conv_lrelu(p["dc2"], xd, padding=2, dilation=2)
    xd = _conv_lrelu(p["dc3"], xd, padding=4, dilation=4)
    xd = _conv_lrelu(p["dc4"], xd, padding=8, dilation=8)
    xd = _conv_lrelu(p["dc5"], xd, padding=16, dilation=16)
    xd = _conv_lrelu(p["dc6"], xd, padding=1, dilation=1)
    flow2 = flow2 + conv2d(xd, p["dc7"]["w"], p["dc7"]["b"], stride=1, padding=1)

    flow1 = upsample_bilinear(flow2, scale=4)
    return flow1, [flow2, flow3, flow4, flow5, flow6]


def optical_flow_forward(fpn_p, flow_p, x1, x2):
    # NCHW inputs (PyTorch convention) -> NHWC internally -> NCHW outputs.
    x1 = jnp.transpose(x1, (0, 2, 3, 1))
    x2 = jnp.transpose(x2, (0, 2, 3, 1))
    f1 = fpn_forward(fpn_p, x1)
    f2 = fpn_forward(fpn_p, x2)
    flow1, flows = flownet_forward(flow_p, f1, f2)
    to_nchw = lambda t: jnp.transpose(t, (0, 3, 1, 2))
    return to_nchw(flow1), [to_nchw(f) for f in flows]


# ---------------------------------- main -------------------------------------

if __name__ == "__main__":
    key = jax.random.PRNGKey(0)
    kx1, kx2, kparams = jax.random.split(key, 3)
    # Smallest spatial size compatible with the 6-level (/64) pyramid.
    x1 = jax.random.normal(kx1, (1, 3, 64, 64), dtype=jnp.float32)
    x2 = jax.random.normal(kx2, (1, 3, 64, 64), dtype=jnp.float32)

    pg = ParamGen(kparams)
    fpn_params = init_fpn(pg, out_channels=224)
    flow_params = init_flownet(pg)

    flow1, flows = optical_flow_forward(fpn_params, flow_params, x1, x2)
    flow1 = jax.block_until_ready(flow1)
    flows = [jax.block_until_ready(f) for f in flows]

    assert flow1.shape == (1, 2, 64, 64), flow1.shape
    expected = [(1, 2, 16, 16), (1, 2, 8, 8), (1, 2, 4, 4),
                (1, 2, 2, 2), (1, 2, 1, 1)]
    assert [tuple(f.shape) for f in flows] == expected, [f.shape for f in flows]
    assert bool(jnp.isfinite(flow1).all())
    print("KERNEL_OK")
</pallas_src>

<mosaic_0001>
module attributes {stable_mosaic.version = 11 : i64} {
  func.func @_mm_kernel(%arg0: i32, %arg1: i32, %arg2: i32, %arg3: memref<512x128xbf16, #tpu.memory_space<vmem>>, %arg4: memref<128x128xbf16, #tpu.memory_space<vmem>>, %arg5: memref<1x128xf32, #tpu.memory_space<vmem>>, %arg6: memref<512x128xf32, #tpu.memory_space<vmem>>, %arg7: memref<512x128xf32, #tpu.memory_space<vmem>>) attributes {dimension_semantics = [#tpu.dimension_semantics<parallel>, #tpu.dimension_semantics<parallel>, #tpu.dimension_semantics<arbitrary>], iteration_bounds = array<i64: 8, 1, 1>, scalar_prefetch = 0 : i64, scratch_operands = 1 : i64, tpu.core_type = #tpu.core_type<tc>, window_params = [{transform_indices = @transform_0, window_bounds = array<i64: 512, 128>}, {transform_indices = @transform_1, window_bounds = array<i64: 128, 128>}, {transform_indices = @transform_2, window_bounds = array<i64: 1, 128>}, {transform_indices = @transform_3, window_bounds = array<i64: 512, 128>}]} {
    %c0_i32 = arith.constant 0 : i32
    %0 = arith.cmpi eq, %arg2, %c0_i32 : i32
    %1 = arith.extui %0 : i1 to i32
    %c0_i32_0 = arith.constant 0 : i32
    %2 = arith.cmpi ne, %1, %c0_i32_0 : i32
    scf.if %2 {
      %cst_10 = arith.constant 0.000000e+00 : f32
      %12 = vector.broadcast %cst_10 : f32 to vector<512x128xf32>
      %c0_11 = arith.constant 0 : index
      %c0_12 = arith.constant 0 : index
      %13 = vector.load %arg7[%c0_11, %c0_12] : memref<512x128xf32, #tpu.memory_space<vmem>>, vector<512x128xf32>
      tpu.vector_store %arg7[%c0_11, %c0_12], %12 {strides = array<i32>} : memref<512x128xf32, #tpu.memory_space<vmem>>, vector<512x128xf32>,
    } else {
    }
    %c0 = arith.constant 0 : index
    %c0_1 = arith.constant 0 : index
    %3 = vector.load %arg7[%c0, %c0_1] : memref<512x128xf32, #tpu.memory_space<vmem>>, vector<512x128xf32>
    %c0_2 = arith.constant 0 : index
    %c0_3 = arith.constant 0 : index
    %4 = vector.load %arg3[%c0_2, %c0_3] : memref<512x128xbf16, #tpu.memory_space<vmem>>, vector<512x128xbf16>
    %c0_4 = arith.constant 0 : index
    %c0_5 = arith.constant 0 : index
    %5 = vector.load %arg4[%c0_4, %c0_5] : memref<128x128xbf16, #tpu.memory_space<vmem>>, vector<128x128xbf16>
    %cst = arith.constant dense<0.000000e+00> : vector<512x128xf32>
    %6 = tpu.matmul %4, %5, %cst {dimension_numbers = #tpu.dot_dimension_numbers<[1], [0], [0], [1], [0, 0, 1, 1], [], []>} : vector<512x128xbf16>, vector<128x128xbf16>, vector<512x128xf32> -> vector<512x128xf32>
    %7 = arith.addf %3, %6 : vector<512x128xf32>
    %c0_6 = arith.constant 0 : index
    %c0_7 = arith.constant 0 : index
    %8 = vector.load %arg7[%c0_6, %c0_7] : memref<512x128xf32, #tpu.memory_space<vmem>>, vector<512x128xf32>
    tpu.vector_store %arg7[%c0_6, %c0_7], %7 {strides = array<i32>} : memref<512x128xf32, #tpu.memory_space<vmem>>, vector<512x128xf32>,
    %c0_i32_8 = arith.constant 0 : i32
    %9 = arith.cmpi eq, %arg2, %c0_i32_8 : i32
    %10 = arith.extui %9 : i1 to i32
    %c0_i32_9 = arith.constant 0 : i32
    %11 = arith.cmpi ne, %10, %c0_i32_9 : i32
    scf.if %11 {
      %c0_10 = arith.constant 0 : index
      %c0_11 = arith.constant 0 : index
      %12 = vector.load %arg7[%c0_10, %c0_11] : memref<512x128xf32, #tpu.memory_space<vmem>>, vector<512x128xf32>
      %c0_12 = arith.constant 0 : index
      %c0_13 = arith.constant 0 : index
      %13 = vector.load %arg5[%c0_12, %c0_13] : memref<1x128xf32, #tpu.memory_space<vmem>>, vector<1x128xf32>
      %14 = vector.broadcast %13 : vector<1x128xf32> to vector<512x128xf32>
      %15 = arith.addf %12, %14 : vector<512x128xf32>
      %c0_14 = arith.constant 0 : index
      %c0_15 = arith.constant 0 : index
      %16 = vector.load %arg6[%c0_14, %c0_15] : memref<512x128xf32, #tpu.memory_space<vmem>>, vector<512x128xf32>
      tpu.vector_store %arg6[%c0_14, %c0_15], %15 {strides = array<i32>} : memref<512x128xf32, #tpu.memory_space<vmem>>, vector<512x128xf32>,
    } else {
    }
    return
  }
  func.func @transform_0(%arg0: i32, %arg1: i32, %arg2: i32) -> (i32, i32) {
    %c0_i32 = arith.constant 0 : i32
    return %arg0, %arg2 : i32, i32
  }
  func.func @transform_1(%arg0: i32, %arg1: i32, %arg2: i32) -> (i32, i32) {
    %c0_i32 = arith.constant 0 : i32
    return %arg2, %arg1 : i32, i32
  }
  func.func @transform_2(%arg0: i32, %arg1: i32, %arg2: i32) -> (i32, i32) {
    %c0_i32 = arith.constant 0 : i32
    %c0_i32_0 = arith.constant 0 : i32
    return %c0_i32, %arg1 : i32, i32
  }
  func.func @transform_3(%arg0: i32, %arg1: i32, %arg2: i32) -> (i32, i32) {
    %c0_i32 = arith.constant 0 : i32
    return %arg0, %arg1 : i32, i32
  }
}

</mosaic_0001>

<bundles_post_ra>
// kernel: conv2d.1
= control target key start
LH: loop header
LB: loop body
LE: loop exit
PB: predicated region body
PF: predicated region fallthrough
CT: control target
= control target key end

     0   :  { %s1740_s12 = smov 0   ;;  %s1742_s13 = smov 0   ;;  %s1970_s0 = inlined_call_operand.vmem [shape: bf16[4096,128], index: 0, kind: input, shape index: {}]   ;;  %s1971_s1 = inlined_call_operand.vmem [shape: bf16[128,128], index: 1, kind: input, shape index: {}]   ;;  %s1972_s2 = inlined_call_operand.vmem [shape: f32[1,128], index: 2, kind: input, shape index: {}]   ;;  %s1973_s3 = inlined_call_operand.vmem [shape: f32[4096,128], index: 3, kind: output, shape index: {}]  }
   0x1   :  { %s1744_s14 = smov 0  }
   0x2 LB: > { %s32_s15 = sadd.s32 1, %s1714_s13  ;;  %p1448_p0 = scmp.ge.s32.totalorder %s1718_s14, 1  ;;  %s1718_s14 = sphi %s1744_s14, %s13_s14   ;;  %s1714_s13 = sphi %s1742_s13, %s1975_s13   ;;  %s1710_s12 = sphi %s1740_s12, %s1974_s12  }
   0x3   : > { %p34_p1 = scmp.ge.s32.totalorder %s32_s15, 8  ;;  %p188_p2 = scmp.lt.s32.totalorder %s1718_s14, 9 }
   0x5   : > { %s1977_s15 = smov (%p34_p1, %s32_s15), 0  ;;  %p189_p3 = pnand %p1448_p0, %p188_p2 }
   0x6   : > { %v1656_v0 = vld [vmem:[%s1971_s1] sm:$0xff] (!%p189_p3)   ;;  %s1449_s18 = sshll.u32 (!%p189_p3), %s1710_s12, 6  ;;  %v1657_v1 = vld [vmem:[%s1971_s1 + $0x8] sm:$0xff] (!%p189_p3)   ;;  %v1658_v2 = vld [vmem:[%s1971_s1 + $0x10] sm:$0xff] (!%p189_p3)  }
   0x7   : > { %192 = sbr.rel (%p189_p3) target bundleno = 313 (0x139), region = 32  ;;  %p230_p4 = scmp.lt.s32.totalorder (!%p189_p3), %s1449_s18, 511  ;;  %1536 = vmatprep.subr.bf16.mxu0 (!%p189_p3), %v1656_v0  ;;  %1616 = vmatprep.subr.bf16.mxu1 (!%p189_p3), %v1656_v0  ;;  %v1659_v3 = vld [vmem:[%s1971_s1 + $0x18] sm:$0xff] (!%p189_p3)   ;;  %v1660_v6 = vld [vmem:[%s1971_s1 + $0x20] sm:$0xff] (!%p189_p3)   ;;  %v1661_v7 = vld [vmem:[%s1971_s1 + $0x28] sm:$0xff] (!%p189_p3)  }
   0x8   : > { %1537 = vmatpush3.bf16.msra.mxu0 (!%p189_p3), %v1656_v0  ;;  %1624 = vmatpush3.bf16.msra.mxu1 (!%p189_p3), %v1656_v0  ;;  %v1662_v8 = vld [vmem:[%s1971_s1 + $0x30] sm:$0xff] (!%p189_p3)   ;;  %v1663_v9 = vld [vmem:[%s1971_s1 + $0x38] sm:$0xff] (!%p189_p3)   ;;  %v1826_v40 = vld [vmem:[%s1972_s2] ss:$0 sm:$0xff] (!%p189_p3) }
   0x9   : > { %1538 = vmatprep.subr.bf16.mxu0 (!%p189_p3), %v1657_v1  ;;  %1617 = vmatprep.subr.bf16.mxu1 (!%p189_p3), %v1657_v1 }
   0xc   : > { %1539 = vmatpush3.bf16.msra.mxu0 (!%p189_p3), %v1657_v1  ;;  %1625 = vmatpush3.bf16.msra.mxu1 (!%p189_p3), %v1657_v1 }
   0xd   : > { %1540 = vmatprep.subr.bf16.mxu0 (!%p189_p3), %v1658_v2  ;;  %1618 = vmatprep.subr.bf16.mxu1 (!%p189_p3), %v1658_v2 }
   0xe   : > { %s1979_s18 = smov (!%p230_p4, %s1449_s18), 511 }
   0xf   : > { %s1450_s23 = sshll.u32 %s1979_s18, 2  ;;  %s1452_s10 = sshll.u32 %s1979_s18, 3 }
  0x10   : > { %s1773_s26 = scalar_lea.vmem %s1970_s0, %s1450_s23  ;;  %1541 = vmatpush3.bf16.msra.mxu0 %v1658_v2  ;;  %1626 = vmatpush3.bf16.msra.mxu1 %v1658_v2  ;;  %s1831_s19 = scalar_lea.vmem %s1973_s3, %s1452_s10 }
  0x11   : > { %v1664_v4 = vld [vmem:[%s1773_s26] sm:$0xff]   ;;  %1542 = vmatprep.subr.bf16.mxu0 %v1659_v3  ;;  %1619 = vmatprep.subr.bf16.mxu1 %v1659_v3  ;;  %v1666_v10 = vld [vmem:[%s1773_s26 + $0x8] sm:$0xff]   ;;  %v1668_v12 = vld [vmem:[%s1773_s26 + $0x10] sm:$0xff]  }
  0x12   : > { %v1665_v5 = vld [vmem:[%s1773_s26 + $0x80] sm:$0xff]   ;;  %1552 = vmatprep.mubr.bf16.mxu0 %v1664_v4  ;;  %v1667_v11 = vld [vmem:[%s1773_s26 + $0x88] sm:$0xff]   ;;  %v1669_v13 = vld [vmem:[%s1773_s26 + $0x90] sm:$0xff]  }
  0x13   : > { %1584 = vmatprep.mubr.bf16.mxu1 %v1665_v5  ;;  %v1670_v14 = vld [vmem:[%s1773_s26 + $0x18] sm:$0xff]   ;;  %v1672_v16 = vld [vmem:[%s1773_s26 + $0x20] sm:$0xff]   ;;  %v1674_v18 = vld [vmem:[%s1773_s26 + $0x28] sm:$0xff]  }
  0x14   : > { %1543 = vmatpush3.bf16.msra.mxu0 %v1659_v3  ;;  %1627 = vmatpush3.bf16.msra.mxu1 %v1659_v3  ;;  %v1671_v15 = vld [vmem:[%s1773_s26 + $0x98] sm:$0xff]   ;;  %v1673_v17 = vld [vmem:[%s1773_s26 + $0xa0] sm:$0xff]   ;;  %v1675_v19 = vld [vmem:[%s1773_s26 + $0xa8] sm:$0xff]  }
  0x15   : > { %1544 = vmatprep.subr.bf16.mxu0 %v1660_v6  ;;  %1620 = vmatprep.subr.bf16.mxu1 %v1660_v6  ;;  %v1676_v20 = vld [vmem:[%s1773_s26 + $0x30] sm:$0xff]   ;;  %v1678_v22 = vld [vmem:[%s1773_s26 + $0x38] sm:$0xff]   ;;  %v1680_v24 = vld [vmem:[%s1773_s26 + $0x40] sm:$0xff]  }
  0x16   : > { %v1677_v21 = vld [vmem:[%s1773_s26 + $0xb0] sm:$0xff]   ;;  %v1679_v23 = vld [vmem:[%s1773_s26 + $0xb8] sm:$0xff]   ;;  %v1681_v25 = vld [vmem:[%s1773_s26 + $0xc0] sm:$0xff]  }
  0x17   : > { %v1682_v26 = vld [vmem:[%s1773_s26 + $0x48] sm:$0xff]   ;;  %v1684_v28 = vld [vmem:[%s1773_s26 + $0x50] sm:$0xff]   ;;  %v1686_v30 = vld [vmem:[%s1773_s26 + $0x58] sm:$0xff]  }
  0x18   : > { %1545 = vmatpush3.bf16.msra.mxu0 %v1660_v6  ;;  %1628 = vmatpush3.bf16.msra.mxu1 %v1660_v6  ;;  %v1683_v27 = vld [vmem:[%s1773_s26 + $0xc8] sm:$0xff]   ;;  %v1685_v29 = vld [vmem:[%s1773_s26 + $0xd0] sm:$0xff]   ;;  %v1687_v31 = vld [vmem:[%s1773_s26 + $0xd8] sm:$0xff]  }
  0x19   : > { %1546 = vmatprep.subr.bf16.mxu0 %v1661_v7  ;;  %1621 = vmatprep.subr.bf16.mxu1 %v1661_v7  ;;  %v1688_v32 = vld [vmem:[%s1773_s26 + $0x60] sm:$0xff]   ;;  %v1690_v34 = vld [vmem:[%s1773_s26 + $0x68] sm:$0xff]   ;;  %v1692_v36 = vld [vmem:[%s1773_s26 + $0x70] sm:$0xff]  }
  0x1a   : > { %v1689_v33 = vld [vmem:[%s1773_s26 + $0xe0] sm:$0xff]   ;;  %v1691_v35 = vld [vmem:[%s1773_s26 + $0xe8] sm:$0xff]   ;;  %v1693_v37 = vld [vmem:[%s1773_s26 + $0xf0] sm:$0xff]  }
  0x1b   : > { %v1694_v38 = vld [vmem:[%s1773_s26 + $0x78] sm:$0xff]  }
  0x1c   : > { %1547 = vmatpush3.bf16.msra.mxu0 %v1661_v7  ;;  %1629 = vmatpush3.bf16.msra.mxu1 %v1661_v7  ;;  %v1695_v39 = vld [vmem:[%s1773_s26 + $0xf8] sm:$0xff]  }
  0x1d   : > { %1548 = vmatprep.subr.bf16.mxu0 %v1662_v8  ;;  %1622 = vmatprep.subr.bf16.mxu1 %v1662_v8 }
  0x20   : > { %1549 = vmatpush3.bf16.msra.mxu0 %v1662_v8  ;;  %1630 = vmatpush3.bf16.msra.mxu1 %v1662_v8 }
  0x21   : > { %1550 = vmatprep.subr.bf16.mxu0 %v1663_v9  ;;  %1623 = vmatprep.subr.bf16.mxu1 %v1663_v9 }
  0x24   : > { %1551 = vmatpush3.bf16.msra.mxu0 %v1663_v9  ;;  %1631 = vmatpush3.bf16.msra.mxu1 %v1663_v9 }
  0x27   : > { %1553 = vmatmul.mubr.bf16.vlgmr.msra.gmra.mrb[0].mxu0 %v1666_v10  ;;  %1585 = vmatmul.mubr.bf16.vlgmr.msra.gmra.mrb[0].mxu1 %v1667_v11 }
  0x28   : > { %1556 = vmatprep.mubr.bf16.mxu0 %v1668_v12  ;;  %1588 = vmatprep.mubr.bf16.mxu1 %v1669_v13 }
  0x2f   : > { %1557 = vmatmul.mubr.bf16.gmra.mrb[4].mxu0 %v1670_v14  ;;  %1589 = vmatmul.mubr.bf16.gmra.mrb[4].mxu1 %v1671_v15 }
  0x30   : > { %1560 = vmatprep.mubr.bf16.mxu0 %v1672_v16  ;;  %1592 = vmatprep.mubr.bf16.mxu1 %v1673_v17 }
  0x37   : > { %1561 = vmatmul.mubr.bf16.gmra.mrb[8].mxu0 %v1674_v18  ;;  %1593 = vmatmul.mubr.bf16.gmra.mrb[8].mxu1 %v1675_v19 }
  0x38   : > { %1564 = vmatprep.mubr.bf16.mxu0 %v1676_v20  ;;  %1596 = vmatprep.mubr.bf16.mxu1 %v1677_v21 }
  0x3f   : > { %1565 = vmatmul.mubr.bf16.gmra.mrb[12].mxu0 %v1678_v22  ;;  %1597 = vmatmul.mubr.bf16.gmra.mrb[12].mxu1 %v1679_v23 }
  0x40   : > { %1568 = vmatprep.mubr.bf16.mxu0 %v1680_v24  ;;  %1600 = vmatprep.mubr.bf16.mxu1 %v1681_v25 }
  0x47   : > { %1569 = vmatmul.mubr.bf16.gmra.mrb[16].mxu0 %v1682_v26  ;;  %1601 = vmatmul.mubr.bf16.gmra.mrb[16].mxu1 %v1683_v27 }
  0x48   : > { %1572 = vmatprep.mubr.bf16.mxu0 %v1684_v28  ;;  %1604 = vmatprep.mubr.bf16.mxu1 %v1685_v29 }
  0x4f   : > { %1573 = vmatmul.mubr.bf16.gmra.mrb[20].mxu0 %v1686_v30  ;;  %1605 = vmatmul.mubr.bf16.gmra.mrb[20].mxu1 %v1687_v31 }
  0x50   : > { %1576 = vmatprep.mubr.bf16.mxu0 %v1688_v32  ;;  %1608 = vmatprep.mubr.bf16.mxu1 %v1689_v33 }
  0x57   : > { %1577 = vmatmul.mubr.bf16.gmra.mrb[24].mxu0 %v1690_v34  ;;  %1609 = vmatmul.mubr.bf16.gmra.mrb[24].mxu1 %v1691_v35 }
  0x58   : > { %1580 = vmatprep.mubr.bf16.mxu0 %v1692_v36  ;;  %1612 = vmatprep.mubr.bf16.mxu1 %v1693_v37 }
  0x5f   : > { %1581 = vmatmul.mubr.bf16.gmra.mrb[28].mxu0 %v1694_v38  ;;  %1613 = vmatmul.mubr.bf16.gmra.mrb[28].mxu1 %v1695_v39 }
  0xfa   : > { %v1554_v41 = vpop.f32.mrb[0].mxu0  ;;  %v1586_v42 = vpop.f32.mrb[0].mxu1 }
  0xfb   : > { %v1205_v43 = vadd.f32 %v1554_v41, %v1826_v40  ;;  %v1237_v44 = vadd.f32 %v1586_v42, %v1826_v40  ;;  %v746_v45 = vpop.f32.mrb[1].mxu0  ;;  %v874_v46 = vpop.f32.mrb[1].mxu1 }
  0xfc   : > { %v1203_v47 = vadd.f32 %v1826_v40, %v746_v45  ;;  %v1235_v48 = vadd.f32 %v1826_v40, %v874_v46  ;;  %v1555_v49 = vpop.f32.mrb[2].mxu0  ;;  %v1587_v50 = vpop.f32.mrb[2].mxu1 }
  0xfd   : > { %1269 = vst [vmem:[%s1831_s19 + $0x10] sm:$0xff] %v1205_v43  ;;  %1301 = vst [vmem:[%s1831_s19 + $0x110] sm:$0xff] %v1237_v44  ;;  %v1206_v51 = vadd.f32 %v1555_v49, %v1826_v40  ;;  %v1238_v52 = vadd.f32 %v1587_v50, %v1826_v40  ;;  %v749_v53 = vpop.f32.mrb[3].mxu0  ;;  %v877_v54 = vpop.f32.mrb[3].mxu1 }
  0xfe   : > { %1267 = vst [vmem:[%s1831_s19] sm:$0xff] %v1203_v47  ;;  %1299 = vst [vmem:[%s1831_s19 + $0x100] sm:$0xff] %v1235_v48  ;;  %v1204_v55 = vadd.f32 %v1826_v40, %v749_v53  ;;  %v1236_v56 = vadd.f32 %v1826_v40, %v877_v54 }
  0xff   : > { %1270 = vst [vmem:[%s1831_s19 + $0x18] sm:$0xff] %v1206_v51  ;;  %1302 = vst [vmem:[%s1831_s19 + $0x118] sm:$0xff] %v1238_v52 }
 0x100   : > { %1268 = vst [vmem:[%s1831_s19 + $0x8] sm:$0xff] %v1204_v55  ;;  %1300 = vst [vmem:[%s1831_s19 + $0x108] sm:$0xff] %v1236_v56 }
 0x102   : > { %v1558_v57 = vpop.f32.mrb[4].mxu0  ;;  %v1590_v58 = vpop.f32.mrb[4].mxu1 }
 0x103   : > { %v1209_v59 = vadd.f32 %v1558_v57, %v1826_v40  ;;  %v1241_v60 = vadd.f32 %v1590_v58, %v1826_v40  ;;  %v762_v61 = vpop.f32.mrb[5].mxu0  ;;  %v890_v62 = vpop.f32.mrb[5].mxu1 }
 0x104   : > { %v1207_v63 = vadd.f32 %v1826_v40, %v762_v61  ;;  %v1239_v0 = vadd.f32 %v1826_v40, %v890_v62  ;;  %v1559_v1 = vpop.f32.mrb[6].mxu0  ;;  %v1591_v2 = vpop.f32.mrb[6].mxu1 }
 0x105   : > { %1273 = vst [vmem:[%s1831_s19 + $0x30] sm:$0xff] %v1209_v59  ;;  %1305 = vst [vmem:[%s1831_s19 + $0x130] sm:$0xff] %v1241_v60  ;;  %v1210_v3 = vadd.f32 %v1559_v1, %v1826_v40  ;;  %v1242_v4 = vadd.f32 %v1591_v2, %v1826_v40  ;;  %v765_v5 = vpop.f32.mrb[7].mxu0  ;;  %v893_v6 = vpop.f32.mrb[7].mxu1 }
 0x106   : > { %1271 = vst [vmem:[%s1831_s19 + $0x20] sm:$0xff] %v1207_v63  ;;  %1303 = vst [vmem:[%s1831_s19 + $0x120] sm:$0xff] %v1239_v0  ;;  %v1208_v7 = vadd.f32 %v1826_v40, %v765_v5  ;;  %v1240_v8 = vadd.f32 %v1826_v40, %v893_v6 }
 0x107   : > { %1274 = vst [vmem:[%s1831_s19 + $0x38] sm:$0xff] %v1210_v3  ;;  %1306 = vst [vmem:[%s1831_s19 + $0x138] sm:$0xff] %v1242_v4 }
 0x108   : > { %1272 = vst [vmem:[%s1831_s19 + $0x28] sm:$0xff] %v1208_v7  ;;  %1304 = vst [vmem:[%s1831_s19 + $0x128] sm:$0xff] %v1240_v8 }
 0x10a   : > { %v1562_v9 = vpop.f32.mrb[8].mxu0  ;;  %v1594_v10 = vpop.f32.mrb[8].mxu1 }
 0x10b   : > { %v1213_v11 = vadd.f32 %v1562_v9, %v1826_v40  ;;  %v1245_v12 = vadd.f32 %v1594_v10, %v1826_v40  ;;  %v778_v13 = vpop.f32.mrb[9].mxu0  ;;  %v906_v14 = vpop.f32.mrb[9].mxu1 }
 0x10c   : > { %v1211_v15 = vadd.f32 %v1826_v40, %v778_v13  ;;  %v1243_v16 = vadd.f32 %v1826_v40, %v906_v14  ;;  %v1563_v17 = vpop.f32.mrb[10].mxu0  ;;  %v1595_v18 = vpop.f32.mrb[10].mxu1 }
 0x10d   : > { %1277 = vst [vmem:[%s1831_s19 + $0x50] sm:$0xff] %v1213_v11  ;;  %1309 = vst [vmem:[%s1831_s19 + $0x150] sm:$0xff] %v1245_v12  ;;  %v1214_v19 = vadd.f32 %v1563_v17, %v1826_v40  ;;  %v1246_v20 = vadd.f32 %v1595_v18, %v1826_v40  ;;  %v781_v21 = vpop.f32.mrb[11].mxu0  ;;  %v909_v22 = vpop.f32.mrb[11].mxu1 }
 0x10e   : > { %1275 = vst [vmem:[%s1831_s19 + $0x40] sm:$0xff] %v1211_v15  ;;  %1307 = vst [vmem:[%s1831_s19 + $0x140] sm:$0xff] %v1243_v16  ;;  %v1212_v23 = vadd.f32 %v1826_v40, %v781_v21  ;;  %v1244_v24 = vadd.f32 %v1826_v40, %v909_v22 }
 0x10f   : > { %1278 = vst [vmem:[%s1831_s19 + $0x58] sm:$0xff] %v1214_v19  ;;  %1310 = vst [vmem:[%s1831_s19 + $0x158] sm:$0xff] %v1246_v20 }
 0x110   : > { %1276 = vst [vmem:[%s1831_s19 + $0x48] sm:$0xff] %v1212_v23  ;;  %1308 = vst [vmem:[%s1831_s19 + $0x148] sm:$0xff] %v1244_v24 }
 0x112   : > { %v1566_v25 = vpop.f32.mrb[12].mxu0  ;;  %v1598_v26 = vpop.f32.mrb[12].mxu1 }
 0x113   : > { %v1217_v27 = vadd.f32 %v1566_v25, %v1826_v40  ;;  %v1249_v28 = vadd.f32 %v1598_v26, %v1826_v40  ;;  %v794_v29 = vpop.f32.mrb[13].mxu0  ;;  %v922_v30 = vpop.f32.mrb[13].mxu1 }
 0x114   : > { %v1215_v31 = vadd.f32 %v1826_v40, %v794_v29  ;;  %v1247_v32 = vadd.f32 %v1826_v40, %v922_v30  ;;  %v1567_v33 = vpop.f32.mrb[14].mxu0  ;;  %v1599_v34 = vpop.f32.mrb[14].mxu1 }
 0x115   : > { %1281 = vst [vmem:[%s1831_s19 + $0x70] sm:$0xff] %v1217_v27  ;;  %1313 = vst [vmem:[%s1831_s19 + $0x170] sm:$0xff] %v1249_v28  ;;  %v1218_v35 = vadd.f32 %v1567_v33, %v1826_v40  ;;  %v1250_v36 = vadd.f32 %v1599_v34, %v1826_v40  ;;  %v797_v37 = vpop.f32.mrb[15].mxu0  ;;  %v925_v38 = vpop.f32.mrb[15].mxu1 }
 0x116   : > { %1279 = vst [vmem:[%s1831_s19 + $0x60] sm:$0xff] %v1215_v31  ;;  %1311 = vst [vmem:[%s1831_s19 + $0x160] sm:$0xff] %v1247_v32  ;;  %v1216_v39 = vadd.f32 %v1826_v40, %v797_v37  ;;  %v1248_v41 = vadd.f32 %v1826_v40, %v925_v38 }
 0x117   : > { %1282 = vst [vmem:[%s1831_s19 + $0x78] sm:$0xff] %v1218_v35  ;;  %1314 = vst [vmem:[%s1831_s19 + $0x178] sm:$0xff] %v1250_v36 }
 0x118   : > { %1280 = vst [vmem:[%s1831_s19 + $0x68] sm:$0xff] %v1216_v39  ;;  %1312 = vst [vmem:[%s1831_s19 + $0x168] sm:$0xff] %v1248_v41 }
 0x11a   : > { %v1570_v42 = vpop.f32.mrb[16].mxu0  ;;  %v1602_v43 = vpop.f32.mrb[16].mxu1 }
 0x11b   : > { %v1221_v44 = vadd.f32 %v1570_v42, %v1826_v40  ;;  %v1253_v45 = vadd.f32 %v1602_v43, %v1826_v40  ;;  %v810_v46 = vpop.f32.mrb[17].mxu0  ;;  %v938_v47 = vpop.f32.mrb[17].mxu1 }
 0x11c   : > { %v1219_v48 = vadd.f32 %v1826_v40, %v810_v46  ;;  %v1251_v49 = vadd.f32 %v1826_v40, %v938_v47  ;;  %v1571_v50 = vpop.f32.mrb[18].mxu0  ;;  %v1603_v51 = vpop.f32.mrb[18].mxu1 }
 0x11d   : > { %1285 = vst [vmem:[%s1831_s19 + $0x90] sm:$0xff] %v1221_v44  ;;  %1317 = vst [vmem:[%s1831_s19 + $0x190] sm:$0xff] %v1253_v45  ;;  %v1222_v52 = vadd.f32 %v1571_v50, %v1826_v40  ;;  %v1254_v53 = vadd.f32 %v1603_v51, %v1826_v40  ;;  %v813_v54 = vpop.f32.mrb[19].mxu0  ;;  %v941_v55 = vpop.f32.mrb[19].mxu1 }
 0x11e   : > { %1283 = vst [vmem:[%s1831_s19 + $0x80] sm:$0xff] %v1219_v48  ;;  %1315 = vst [vmem:[%s1831_s19 + $0x180] sm:$0xff] %v1251_v49  ;;  %v1220_v56 = vadd.f32 %v1826_v40, %v813_v54  ;;  %v1252_v57 = vadd.f32 %v1826_v40, %v941_v55 }
 0x11f   : > { %1286 = vst [vmem:[%s1831_s19 + $0x98] sm:$0xff] %v1222_v52  ;;  %1318 = vst [vmem:[%s1831_s19 + $0x198] sm:$0xff] %v1254_v53 }
 0x120   : > { %1284 = vst [vmem:[%s1831_s19 + $0x88] sm:$0xff] %v1220_v56  ;;  %1316 = vst [vmem:[%s1831_s19 + $0x188] sm:$0xff] %v1252_v57 }
 0x122   : > { %v1574_v58 = vpop.f32.mrb[20].mxu0  ;;  %v1606_v59 = vpop.f32.mrb[20].mxu1 }
 0x123   : > { %v1225_v60 = vadd.f32 %v1574_v58, %v1826_v40  ;;  %v1257_v61 = vadd.f32 %v1606_v59, %v1826_v40  ;;  %v826_v62 = vpop.f32.mrb[21].mxu0  ;;  %v954_v63 = vpop.f32.mrb[21].mxu1 }
 0x124   : > { %v1223_v0 = vadd.f32 %v1826_v40, %v826_v62  ;;  %v1255_v1 = vadd.f32 %v1826_v40, %v954_v63  ;;  %v1575_v2 = vpop.f32.mrb[22].mxu0  ;;  %v1607_v3 = vpop.f32.mrb[22].mxu1 }
 0x125   : > { %1289 = vst [vmem:[%s1831_s19 + $0xb0] sm:$0xff] %v1225_v60  ;;  %1321 = vst [vmem:[%s1831_s19 + $0x1b0] sm:$0xff] %v1257_v61  ;;  %v1226_v4 = vadd.f32 %v1575_v2, %v1826_v40  ;;  %v1258_v5 = vadd.f32 %v1607_v3, %v1826_v40  ;;  %v829_v6 = vpop.f32.mrb[23].mxu0  ;;  %v957_v7 = vpop.f32.mrb[23].mxu1 }
 0x126   : > { %1287 = vst [vmem:[%s1831_s19 + $0xa0] sm:$0xff] %v1223_v0  ;;  %1319 = vst [vmem:[%s1831_s19 + $0x1a0] sm:$0xff] %v1255_v1  ;;  %v1224_v8 = vadd.f32 %v1826_v40, %v829_v6  ;;  %v1256_v9 = vadd.f32 %v1826_v40, %v957_v7 }
 0x127   : > { %1290 = vst [vmem:[%s1831_s19 + $0xb8] sm:$0xff] %v1226_v4  ;;  %1322 = vst [vmem:[%s1831_s19 + $0x1b8] sm:$0xff] %v1258_v5 }
 0x128   : > { %1288 = vst [vmem:[%s1831_s19 + $0xa8] sm:$0xff] %v1224_v8  ;;  %1320 = vst [vmem:[%s1831_s19 + $0x1a8] sm:$0xff] %v1256_v9 }
 0x12a   : > { %v1578_v10 = vpop.f32.mrb[24].mxu0  ;;  %v1610_v11 = vpop.f32.mrb[24].mxu1 }
 0x12b   : > { %v1229_v12 = vadd.f32 %v1578_v10, %v1826_v40  ;;  %v1261_v13 = vadd.f32 %v1610_v11, %v1826_v40  ;;  %v842_v14 = vpop.f32.mrb[25].mxu0  ;;  %v970_v15 = vpop.f32.mrb[25].mxu1 }
 0x12c   : > { %v1227_v16 = vadd.f32 %v1826_v40, %v842_v14  ;;  %v1259_v17 = vadd.f32 %v1826_v40, %v970_v15  ;;  %v1579_v18 = vpop.f32.mrb[26].mxu0  ;;  %v1611_v19 = vpop.f32.mrb[26].mxu1 }
 0x12d   : > { %1293 = vst [vmem:[%s1831_s19 + $0xd0] sm:$0xff] %v1229_v12  ;;  %1325 = vst [vmem:[%s1831_s19 + $0x1d0] sm:$0xff] %v1261_v13  ;;  %v1230_v20 = vadd.f32 %v1579_v18, %v1826_v40  ;;  %v1262_v21 = vadd.f32 %v1611_v19, %v1826_v40  ;;  %v845_v22 = vpop.f32.mrb[27].mxu0  ;;  %v973_v23 = vpop.f32.mrb[27].mxu1 }
 0x12e   : > { %1291 = vst [vmem:[%s1831_s19 + $0xc0] sm:$0xff] %v1227_v16  ;;  %1323 = vst [vmem:[%s1831_s19 + $0x1c0] sm:$0xff] %v1259_v17  ;;  %v1228_v24 = vadd.f32 %v1826_v40, %v845_v22  ;;  %v1260_v25 = vadd.f32 %v1826_v40, %v973_v23 }
 0x12f   : > { %1294 = vst [vmem:[%s1831_s19 + $0xd8] sm:$0xff] %v1230_v20  ;;  %1326 = vst [vmem:[%s1831_s19 + $0x1d8] sm:$0xff] %v1262_v21 }
 0x130   : > { %1292 = vst [vmem:[%s1831_s19 + $0xc8] sm:$0xff] %v1228_v24  ;;  %1324 = vst [vmem:[%s1831_s19 + $0x1c8] sm:$0xff] %v1260_v25 }
 0x132   : > { %v1582_v26 = vpop.f32.mrb[28].mxu0  ;;  %v1614_v27 = vpop.f32.mrb[28].mxu1 }
 0x133   : > { %v1233_v28 = vadd.f32 %v1582_v26, %v1826_v40  ;;  %v1265_v29 = vadd.f32 %v1614_v27, %v1826_v40  ;;  %v858_v30 = vpop.f32.mrb[29].mxu0  ;;  %v986_v31 = vpop.f32.mrb[29].mxu1 }
 0x134   : > { %v1231_v32 = vadd.f32 %v1826_v40, %v858_v30  ;;  %v1263_v33 = vadd.f32 %v1826_v40, %v986_v31  ;;  %v1583_v34 = vpop.f32.mrb[30].mxu0  ;;  %v1615_v35 = vpop.f32.mrb[30].mxu1 }
 0x135   : > { %1297 = vst [vmem:[%s1831_s19 + $0xf0] sm:$0xff] %v1233_v28  ;;  %1329 = vst [vmem:[%s1831_s19 + $0x1f0] sm:$0xff] %v1265_v29  ;;  %v1234_v36 = vadd.f32 %v1583_v34, %v1826_v40  ;;  %v1266_v37 = vadd.f32 %v1615_v35, %v1826_v40  ;;  %v861_v38 = vpop.f32.mrb[31].mxu0  ;;  %v989_v39 = vpop.f32.mrb[31].mxu1 }
 0x136   : > { %1295 = vst [vmem:[%s1831_s19 + $0xe0] sm:$0xff] %v1231_v32  ;;  %1327 = vst [vmem:[%s1831_s19 + $0x1e0] sm:$0xff] %v1263_v33  ;;  %v1232_v41 = vadd.f32 %v1826_v40, %v861_v38  ;;  %v1264_v42 = vadd.f32 %v1826_v40, %v989_v39 }
 0x137   : > { %1298 = vst [vmem:[%s1831_s19 + $0xf8] sm:$0xff] %v1234_v36  ;;  %1330 = vst [vmem:[%s1831_s19 + $0x1f8] sm:$0xff] %v1266_v37 }
 0x138   : > { %1296 = vst [vmem:[%s1831_s19 + $0xe8] sm:$0xff] %v1232_v41  ;;  %1328 = vst [vmem:[%s1831_s19 + $0x1e8] sm:$0xff] %v1264_v42 }
 0x139 PF: > { %s13_s14 = sadd.s32 1, %s1718_s14   ;;  %s1974_s12 = smov %s1714_s13 }
 0x13a   : > { %p10_p5 = scmp.ge.s32.totalorder %s13_s14, 10   ;;  %s1975_s13 = smov %s1977_s15 }
 0x13c   :  { %12 = sbr.rel (!%p10_p5) target bundleno = 2 (0x2), region = 76 }

</bundles_post_ra>
